<compile_context>
chip_gen: v7x
topology: tpu7x:2x2x1
jax: 0.10.0
libtpu: 0.0.40
codegen_flags: <defaults>
</compile_context>

<pallas_src>
import functools

import jax
import jax.numpy as jnp
from jax.experimental import pallas as pl
from jax.experimental.pallas import tpu as pltpu


def _start_logits_kernel_masked(h_ref, w_ref, b_ref, pm_ref, o_ref, *, big_neg):
    # h_ref : (B, S_TILE, H) VMEM
    # w_ref : (1, H)         VMEM  (nn.Linear weight, out_features=1)
    # b_ref : (1,)           SMEM  (nn.Linear bias)
    # pm_ref: (B, S_TILE)    VMEM
    # o_ref : (B, S_TILE)    VMEM
    h = h_ref[...].astype(jnp.float32)              # (B, S_TILE, H)
    w = w_ref[...].astype(jnp.float32)              # (1, H) -> broadcasts over (B, S_TILE, H)
    bias = b_ref[0]

    # dense(hidden).squeeze(-1): VPU multiply + lane reduction over H.
    logits = jnp.sum(h * w, axis=-1) + bias         # (B, S_TILE)

    pm = pm_ref[...].astype(jnp.float32)
    o_ref[...] = (logits * (1.0 - pm) - big_neg * pm).astype(o_ref.dtype)


def _start_logits_kernel_nomask(h_ref, w_ref, b_ref, o_ref):
    h = h_ref[...].astype(jnp.float32)              # (B, S_TILE, H)
    w = w_ref[...].astype(jnp.float32)              # (1, H)
    logits = jnp.sum(h * w, axis=-1) + b_ref[0]     # (B, S_TILE)
    o_ref[...] = logits.astype(o_ref.dtype)


def _round_up(x, m):
    return ((x + m - 1) // m) * m


def pooler_start_logits(hidden_states, weight, bias, p_mask=None):
    """hidden_states: (B, S, H); weight: (1, H); bias: (1,); p_mask: (B, S) or None."""
    B, S, H = hidden_states.shape
    out_dtype = hidden_states.dtype
    itemsize = jnp.dtype(hidden_states.dtype).itemsize

    # fp16 params/activations -> -65500, else -1e30 (mirrors the PyTorch dtype
    # check; also guards against writing -1e30 into an fp16 output -> -inf).
    if weight.dtype == jnp.float16 or out_dtype == jnp.float16:
        big_neg = 65500.0
    else:
        big_neg = 1e30

    has_mask = p_mask is not None

    # --- pad seq to a multiple of 128 (lane-dense output tiles) -------------
    S_pad = _round_up(S, 128)
    if S_pad != S:
        hidden_states = jnp.pad(hidden_states, ((0, 0), (0, S_pad - S), (0, 0)))
        if has_mask:
            p_mask = jnp.pad(p_mask, ((0, 0), (0, S_pad - S)), constant_values=1.0)

    # --- pick a seq tile: multiple of 128, divides S_pad, tile <= ~8 MiB so a
    # double-buffered pipeline fits comfortably in v7x's 32 MiB scoped VMEM. --
    s_tile = 128
    for cand in (512, 256, 128):
        if S_pad % cand == 0 and B * cand * H * itemsize <= (8 << 20):
            s_tile = cand
            break
    n_tiles = S_pad // s_tile

    bias1d = jnp.reshape(bias, (1,)).astype(jnp.float32)

    # --- VMEM budget / cost estimate ----------------------------------------
    w_bytes = int(weight.size) * jnp.dtype(weight.dtype).itemsize
    hid_tile_b = B * s_tile * H * itemsize
    out_tile_b = B * s_tile * itemsize
    pm_tile_b = out_tile_b if has_mask else 0
    per_step_bytes = hid_tile_b + out_tile_b + pm_tile_b + w_bytes
    vmem_limit = int(min(100 << 20, max(4 << 20, 3 * per_step_bytes)))

    total_bytes = (hidden_states.size * itemsize
                   + w_bytes
                   + (p_mask.size * jnp.dtype(p_mask.dtype).itemsize if has_mask else 0)
                   + B * S_pad * jnp.dtype(out_dtype).itemsize)
    cost = pl.CostEstimate(flops=2 * B * S_pad * H,
                           bytes_accessed=int(total_bytes),
                           transcendentals=0)

    compiler_params = pltpu.CompilerParams(
        dimension_semantics=("parallel",),   # v7x: shard seq tiles across 2 TCs
        vmem_limit_bytes=vmem_limit,
    )

    hid_spec = pl.BlockSpec((B, s_tile, H), lambda s: (0, s, 0))
    w_spec = pl.BlockSpec((1, H), lambda s: (0, 0))
    b_spec = pl.BlockSpec(memory_space=pltpu.MemorySpace.SMEM)
    row_spec = pl.BlockSpec((B, s_tile), lambda s: (0, s))

    if has_mask:
        kernel = functools.partial(_start_logits_kernel_masked, big_neg=big_neg)
        out = pl.pallas_call(
            kernel,
            out_shape=jax.ShapeDtypeStruct((B, S_pad), out_dtype),
            grid=(n_tiles,),
            in_specs=[hid_spec, w_spec, b_spec, row_spec],
            out_specs=row_spec,
            compiler_params=compiler_params,
            cost_estimate=cost,
        )(hidden_states, weight, bias1d, p_mask)
    else:
        out = pl.pallas_call(
            _start_logits_kernel_nomask,
            out_shape=jax.ShapeDtypeStruct((B, S_pad), out_dtype),
            grid=(n_tiles,),
            in_specs=[hid_spec, w_spec, b_spec],
            out_specs=row_spec,
            compiler_params=compiler_params,
            cost_estimate=cost,
        )(hidden_states, weight, bias1d)

    if S_pad != S:
        out = out[:, :S]
    return out


if __name__ == "__main__":
    B, S, H = 2, 8, 32

    key = jax.random.PRNGKey(0)
    k_h, k_w, k_b, k_m = jax.random.split(key, 4)

    hidden_states = jax.random.normal(k_h, (B, S, H), dtype=jnp.float32)
    # nn.Linear(hidden_size, 1): weight (1, H), bias (1,)
    weight = jax.random.normal(k_w, (1, H), dtype=jnp.float32) * (1.0 / jnp.sqrt(H))
    bias = jax.random.normal(k_b, (1,), dtype=jnp.float32) * 0.1
    # p_mask in {0, 1}
    p_mask = (jax.random.uniform(k_m, (B, S)) > 0.7).astype(jnp.float32)

    out = pooler_start_logits(hidden_states, weight, bias, p_mask)
    out = jax.block_until_ready(out)

    # Pure-JAX reference check
    ref = jnp.einsum("bsh,oh->bs", hidden_states, weight) + bias[0]
    ref = ref * (1.0 - p_mask) - 1e30 * p_mask
    assert out.shape == (B, S)
    assert jnp.allclose(out, ref, rtol=1e-5, atol=1e-5), "mismatch vs reference (masked)"

    # p_mask=None path (no synthetic mask DMA)
    out_nomask = jax.block_until_ready(pooler_start_logits(hidden_states, weight, bias, None))
    ref_nomask = jnp.einsum("bsh,oh->bs", hidden_states, weight) + bias[0]
    assert out_nomask.shape == (B, S)
    assert jnp.allclose(out_nomask, ref_nomask, rtol=1e-5, atol=1e-5), "mismatch vs reference (no mask)"

    print("KERNEL_OK")
</pallas_src>

<mosaic_0001>
module attributes {stable_mosaic.version = 11 : i64} {
  func.func @_start_logits_kernel_masked(%arg0: i32, %arg1: memref<2x128x32xf32, #tpu.memory_space<vmem>>, %arg2: memref<1x32xf32, #tpu.memory_space<vmem>>, %arg3: memref<1xf32, #tpu.memory_space<smem>>, %arg4: memref<2x128xf32, #tpu.memory_space<vmem>>, %arg5: memref<2x128xf32, #tpu.memory_space<vmem>>) attributes {dimension_semantics = [#tpu.dimension_semantics<parallel>], iteration_bounds = array<i64: 1>, scalar_prefetch = 0 : i64, scratch_operands = 0 : i64, tpu.core_type = #tpu.core_type<tc>, window_params = [{transform_indices = @transform_0, window_bounds = array<i64: 2, 128, 32>}, {pipeline_mode = #tpu.pipeline_mode<synchronous>, transform_indices = @transform_1, window_bounds = array<i64: 1, 32>}, {transform_indices = @transform_2, window_bounds = array<i64: 1>}, {transform_indices = @transform_3, window_bounds = array<i64: 2, 128>}, {transform_indices = @transform_4, window_bounds = array<i64: 2, 128>}]} {
    %c0 = arith.constant 0 : index
    %c0_0 = arith.constant 0 : index
    %c0_1 = arith.constant 0 : index
    %0 = vector.load %arg1[%c0, %c0_0, %c0_1] : memref<2x128x32xf32, #tpu.memory_space<vmem>>, vector<2x128x32xf32>
    %c0_2 = arith.constant 0 : index
    %c0_3 = arith.constant 0 : index
    %1 = vector.load %arg2[%c0_2, %c0_3] : memref<1x32xf32, #tpu.memory_space<vmem>>, vector<1x32xf32>
    %c0_4 = arith.constant 0 : index
    %2 = memref.load %arg3[%c0_4] : memref<1xf32, #tpu.memory_space<smem>>
    %3 = vector.shape_cast %1 : vector<1x32xf32> to vector<1x1x32xf32>
    %4 = vector.broadcast %3 : vector<1x1x32xf32> to vector<2x128x32xf32>
    %5 = arith.mulf %0, %4 : vector<2x128x32xf32>
    %cst = arith.constant dense<0.000000e+00> : vector<2x128xf32>
    %6 = vector.multi_reduction <add>, %5, %cst [2] : vector<2x128x32xf32> to vector<2x128xf32>
    %7 = vector.broadcast %2 : f32 to vector<2x128xf32>
    %8 = arith.addf %6, %7 : vector<2x128xf32>
    %c0_5 = arith.constant 0 : index
    %c0_6 = arith.constant 0 : index
    %9 = vector.load %arg4[%c0_5, %c0_6] : memref<2x128xf32, #tpu.memory_space<vmem>>, vector<2x128xf32>
    %cst_7 = arith.constant 1.000000e+00 : f32
    %10 = vector.broadcast %cst_7 : f32 to vector<2x128xf32>
    %11 = arith.subf %10, %9 : vector<2x128xf32>
    %12 = arith.mulf %8, %11 : vector<2x128xf32>
    %cst_8 = arith.constant 1.000000e+30 : f32
    %13 = vector.broadcast %cst_8 : f32 to vector<2x128xf32>
    %14 = arith.mulf %13, %9 : vector<2x128xf32>
    %15 = arith.subf %12, %14 : vector<2x128xf32>
    %c0_9 = arith.constant 0 : index
    %c0_10 = arith.constant 0 : index
    %16 = vector.load %arg5[%c0_9, %c0_10] : memref<2x128xf32, #tpu.memory_space<vmem>>, vector<2x128xf32>
    tpu.vector_store %arg5[%c0_9, %c0_10], %15 {strides = array<i32>} : memref<2x128xf32, #tpu.memory_space<vmem>>, vector<2x128xf32>,
    return
  }
  func.func @transform_0(%arg0: i32) -> (i32, i32, i32) {
    %c0_i32 = arith.constant 0 : i32
    %c0_i32_0 = arith.constant 0 : i32
    %c0_i32_1 = arith.constant 0 : i32
    return %c0_i32, %arg0, %c0_i32_0 : i32, i32, i32
  }
  func.func @transform_1(%arg0: i32) -> (i32, i32) {
    %c0_i32 = arith.constant 0 : i32
    %c0_i32_0 = arith.constant 0 : i32
    %c0_i32_1 = arith.constant 0 : i32
    return %c0_i32, %c0_i32_0 : i32, i32
  }
  func.func @transform_2(%arg0: i32) -> i32 {
    %c0_i32 = arith.constant 0 : i32
    %c0_i32_0 = arith.constant 0 : i32
    return %c0_i32 : i32
  }
  func.func @transform_3(%arg0: i32) -> (i32, i32) {
    %c0_i32 = arith.constant 0 : i32
    %c0_i32_0 = arith.constant 0 : i32
    return %c0_i32, %arg0 : i32, i32
  }
  func.func @transform_4(%arg0: i32) -> (i32, i32) {
    %c0_i32 = arith.constant 0 : i32
    %c0_i32_0 = arith.constant 0 : i32
    return %c0_i32, %arg0 : i32, i32
  }
}

</mosaic_0001>

<bundles_post_ra>
// kernel: tpu_custom_call.1
= control target key start
LH: loop header
LB: loop body
LE: loop exit
PB: predicated region body
PF: predicated region fallthrough
CT: control target
= control target key end

     0   :  { %vm91_vm0 = vcmask 261120   ;;  %s1554_s0 = inlined_call_operand.vmem [shape: f32[2,128,32], index: 0, kind: input, shape index: {}]   ;;  %s1555_s1 = inlined_call_operand.vmem [shape: f32[1,32], index: 1, kind: input, shape index: {}]   ;;  %s1556_s2 = inlined_call_operand.<no memory space> [shape: f32[1], index: 2, kind: input, shape index: {}]   ;;  %s1557_s3 = inlined_call_operand.vmem [shape: f32[2,128], index: 3, kind: input, shape index: {}]   ;;  %s1558_s4 = inlined_call_operand.hbm [shape: f32[2,128], index: 4, kind: output, shape index: {}]  }
   0x1   :  { %v21_v0 = vld [vmem:[%s1554_s0 + $0x10] sm:$0xff]  ;;  %v1020_v1 = vld [vmem:[%s1555_s1] ss:$0 sm:$0xff]  ;;  %v22_v5 = vld [vmem:[%s1554_s0 + $0x18] sm:$0xff] }
   0x2   :  { %v19_v2 = vld [vmem:[%s1554_s0] sm:$0xff]  ;;  %v61_v3 = vmul.f32 %v1020_v1, %v21_v0  ;;  %v20_v6 = vld [vmem:[%s1554_s0 + $0x8] sm:$0xff]  ;;  %v62_v7 = vmul.f32 %v1020_v1, %v22_v5  ;;  %v26_v17 = vld [vmem:[%s1554_s0 + $0x38] sm:$0xff] }
   0x3   :  { %v59_v4 = vmul.f32 %v1020_v1, %v19_v2  ;;  %v60_v8 = vmul.f32 %v1020_v1, %v20_v6  ;;  %v24_v9 = vld [vmem:[%s1554_s0 + $0x28] sm:$0xff]  ;;  %v23_v10 = vld [vmem:[%s1554_s0 + $0x20] sm:$0xff]  ;;  %v25_v18 = vld [vmem:[%s1554_s0 + $0x30] sm:$0xff]  ;;  %v66_v21 = vmul.f32 %v1020_v1, %v26_v17 }
   0x4   :  { %v98_v11 = vsel %vm91_vm0, %v61_v3, 0.0  ;;  %v101_v13 = vsel %vm91_vm0, %v62_v7, 0.0  ;;  %v64_v15 = vmul.f32 %v1020_v1, %v24_v9  ;;  %v63_v16 = vmul.f32 %v1020_v1, %v23_v10  ;;  %v28_v23 = vld [vmem:[%s1554_s0 + $0x48] sm:$0xff]  ;;  %v27_v24 = vld [vmem:[%s1554_s0 + $0x40] sm:$0xff] }
   0x5   :  { %v92_v12 = vsel %vm91_vm0, %v59_v4, 0.0  ;;  %99 = vadd.xlane.f32.xlu1 %v98_v11  ;;  %v95_v14 = vsel %vm91_vm0, %v60_v8, 0.0  ;;  %v65_v22 = vmul.f32 %v1020_v1, %v25_v18 }
   0x6   :  { %93 = vadd.xlane.f32.xlu0 %v92_v12  ;;  %v107_v19 = vsel %vm91_vm0, %v64_v15, 0.0  ;;  %v104_v20 = vsel %vm91_vm0, %v63_v16, 0.0 }
   0x9   :  { %102 = vadd.xlane.f32.xlu1 %v101_v13 }
   0xa   :  { %96 = vadd.xlane.f32.xlu0 %v95_v14 }
   0xb   :  { %10 = vsyncpa [#allocation4], 0  ;;  %v113_v25 = vsel %vm91_vm0, %v66_v21, 0.0  ;;  %v110_v26 = vsel %vm91_vm0, %v65_v22, 0.0  ;;  %v68_v27 = vmul.f32 %v1020_v1, %v28_v23  ;;  %v67_v28 = vmul.f32 %v1020_v1, %v27_v24  ;;  %v30_v29 = vld [vmem:[%s1554_s0 + $0x58] sm:$0xff]  ;;  %v29_v30 = vld [vmem:[%s1554_s0 + $0x50] sm:$0xff] }
   0xc   :  { %v1559_v31 = vlaneseq  ;;  %v70_v34 = vmul.f32 %v1020_v1, %v30_v29  ;;  %v69_v35 = vmul.f32 %v1020_v1, %v29_v30  ;;  %v32_v36 = vld [vmem:[%s1554_s0 + $0x68] sm:$0xff]  ;;  %v31_v37 = vld [vmem:[%s1554_s0 + $0x60] sm:$0xff]  ;;  %v34_v43 = vld [vmem:[%s1554_s0 + $0x78] sm:$0xff]  ;;  %vm761_vm1 = vcmask 130112  }
   0xd   :  { %108 = vadd.xlane.f32.xlu1 %v107_v19  ;;  %v119_v32 = vsel %vm91_vm0, %v68_v27, 0.0  ;;  %v116_v33 = vsel %vm91_vm0, %v67_v28, 0.0  ;;  %v72_v41 = vmul.f32 %v1020_v1, %v32_v36  ;;  %v71_v42 = vmul.f32 %v1020_v1, %v31_v37  ;;  %v33_v44 = vld [vmem:[%s1554_s0 + $0x70] sm:$0xff]  ;;  %v1099_v45 = vld [vmem:[%s1557_s3] sm:$0x3]  ;;  %v36_v53 = vld [vmem:[%s1554_s0 + $0x88] sm:$0xff] }
   0xe   :  { %105 = vadd.xlane.f32.xlu0 %v104_v20  ;;  %v1084_v38 = vshrl.u32 %v1559_v31, 7  ;;  %v125_v39 = vsel %vm91_vm0, %v70_v34, 0.0  ;;  %v122_v40 = vsel %vm91_vm0, %v69_v35, 0.0  ;;  %v1103_v47 = vmul.f32 1e+30, %v1099_v45  ;;  %v35_v54 = vld [vmem:[%s1554_s0 + $0x80] sm:$0xff] }
   0xf   :  { %v74_v48 = vmul.f32 %v1020_v1, %v34_v43  ;;  %v131_v49 = vsel %vm91_vm0, %v72_v41, 0.0  ;;  %v128_v50 = vsel %vm91_vm0, %v71_v42, 0.0  ;;  %v73_v51 = vmul.f32 %v1020_v1, %v33_v44  ;;  %v38_v59 = vld [vmem:[%s1554_s0 + $0x98] sm:$0xff]  ;;  %v37_v60 = vld [vmem:[%s1554_s0 + $0x90] sm:$0xff]  ;;  %v40_v2 = vld [vmem:[%s1554_s0 + $0xa8] sm:$0xff] }
  0x10   :  { %1562 = vst [vmem:[#allocation6_spill] sm:$0xff] %v1084_v38  ;;  %v226_v46 = vsub.s32 0, %v1084_v38  ;;  %v76_v57 = vmul.f32 %v1020_v1, %v36_v53  ;;  %v75_v58 = vmul.f32 %v1020_v1, %v35_v54  ;;  %v78_v63 = vmul.f32 %v1020_v1, %v38_v59  ;;  %v39_v3 = vld [vmem:[%s1554_s0 + $0xa0] sm:$0xff]  ;;  %v42_v8 = vld [vmem:[%s1554_s0 + $0xb8] sm:$0xff]  ;;  %v41_v9 = vld [vmem:[%s1554_s0 + $0xb0] sm:$0xff] }
  0x11   :  { %114 = vadd.xlane.f32.xlu1 %v113_v25  ;;  %v137_v55 = vsel %vm91_vm0, %v74_v48, 0.0  ;;  %v134_v56 = vsel %vm91_vm0, %v73_v51, 0.0  ;;  %v77_v0 = vmul.f32 %v1020_v1, %v37_v60  ;;  %v80_v6 = vmul.f32 %v1020_v1, %v40_v2  ;;  %v44_v14 = vld [vmem:[%s1554_s0 + $0xc8] sm:$0xff]  ;;  %v43_v15 = vld [vmem:[%s1554_s0 + $0xc0] sm:$0xff]  ;;  %v46_v20 = vld [vmem:[%s1554_s0 + $0xd8] sm:$0xff] }
  0x12   :  { %111 = vadd.xlane.f32.xlu0 %v110_v26  ;;  %v1112_v52 = vrot.slane %v1103_v47, %v226_v46  ;;  %v143_v61 = vsel %vm91_vm0, %v76_v57, 0.0  ;;  %v140_v62 = vsel %vm91_vm0, %v75_v58, 0.0  ;;  %v149_v4 = vsel %vm91_vm0, %v78_v63, 0.0  ;;  %v45_v21 = vld [vmem:[%s1554_s0 + $0xd0] sm:$0xff]  ;;  %v48_v26 = vld [vmem:[%s1554_s0 + $0xe8] sm:$0xff]  ;;  %v47_v27 = vld [vmem:[%s1554_s0 + $0xe0] sm:$0xff] }
  0x13   :  { %v146_v5 = vsel %vm91_vm0, %v77_v0, 0.0  ;;  %v79_v7 = vmul.f32 %v1020_v1, %v39_v3  ;;  %v155_v10 = vsel %vm91_vm0, %v80_v6, 0.0  ;;  %v82_v12 = vmul.f32 %v1020_v1, %v42_v8  ;;  %v49_v34 = vld [vmem:[%s1554_s0 + $0xf0] sm:$0xff] }
  0x14   :  { %v81_v13 = vmul.f32 %v1020_v1, %v41_v9  ;;  %v84_v18 = vmul.f32 %v1020_v1, %v44_v14  ;;  %v83_v19 = vmul.f32 %v1020_v1, %v43_v15  ;;  %v86_v24 = vmul.f32 %v1020_v1, %v46_v20 }
  0x15   :  { %120 = vadd.xlane.f32.xlu1 %v119_v32  ;;  %v152_v11 = vsel %vm91_vm0, %v79_v7, 0.0  ;;  %v161_v16 = vsel %vm91_vm0, %v82_v12, 0.0  ;;  %v85_v25 = vmul.f32 %v1020_v1, %v45_v21  ;;  %v88_v30 = vmul.f32 %v1020_v1, %v48_v26 }
  0x16   :  { %117 = vadd.xlane.f32.xlu0 %v116_v33  ;;  %v158_v17 = vsel %vm91_vm0, %v81_v13, 0.0  ;;  %v167_v22 = vsel %vm91_vm0, %v84_v18, 0.0  ;;  %v164_v23 = vsel %vm91_vm0, %v83_v19, 0.0  ;;  %v173_v28 = vsel %vm91_vm0, %v86_v24, 0.0  ;;  %v50_v33 = vld [vmem:[%s1554_s0 + $0xf8] sm:$0xff] }
  0x17   :  { %v170_v29 = vsel %vm91_vm0, %v85_v25, 0.0  ;;  %v87_v32 = vmul.f32 %v1020_v1, %v47_v27  ;;  %v293_v35 = vsub.s32 1, %v1084_v38  ;;  %v90_v36 = vmul.f32 %v1020_v1, %v50_v33 }
  0x18   :  { %v179_v37 = vsel %vm91_vm0, %v88_v30, 0.0  ;;  %v222_v44 = vsub.f32 1.0, %v1099_v45  ;;  %v987_v45 = vmov 0   ;;  %v1281_v12 = vstv %s1556_s2  ;;  %s988_s2 = smov [#allocation3]  }
  0x19   :  { %126 = vadd.xlane.f32.xlu1 %v125_v39  ;;  %v176_v39 = vsel %vm91_vm0, %v87_v32, 0.0  ;;  %v1196_v41 = vrot.slane %v1103_v47, %v293_v35  ;;  %v185_v42 = vsel %vm91_vm0, %v90_v36, 0.0  ;;  %961 = vset.pattern.permute.xlu0 %v987_v45  ;;  %vm768_vm2 = vcmask 195712   ;;  %s950_s27 = sshll.u32 %s988_s2, 4  ;;  %s951_s27 = int_to_ptr.vmem [resolvable:$true] %s950_s27 }
  0x1a   :  { %123 = vadd.xlane.f32.xlu0 %v122_v40  ;;  %v89_v40 = vmul.f32 %v1020_v1, %v49_v34  ;;  %v227_v48 = vrot.slane %v222_v44, %v226_v46  ;;  %v294_v1 = vrot.slane %v222_v44, %v293_v35  ;;  %962 = vset.pattern.permute.xlu1 %v987_v45  ;;  %vm775_vm3 = vcmask 261312   ;;  %s963_s28 = scalar_lea.vmem %s951_s27, 32  ;;  %p968_p1 = scmp.lt.s32.totalorder %s951_s27, %s951_s27 }
  0x1b   :  { %vm782_vm4 = vcmask 326912   ;;  %vm789_vm5 = vcmask 392512   ;;  %vm796_vm6 = vcmask 458112   ;;  %vm803_vm7 = vcmask 523712   ;;  %p964_p0 = scmp.ne.s32.totalorder %s951_s27, %s963_s28  ;;  %p969_p2 = scmp.lt.s32.totalorder %s963_s28, %s963_s28 }
  0x1c   :  { %v182_v43 = vsel %vm91_vm0, %v89_v40, 0.0  ;;  %vm810_vm8 = vcmask 589312   ;;  %vm817_vm9 = vcmask 654912   ;;  %vm824_vm10 = vcmask 720512  }
  0x1d   :  { %132 = vadd.xlane.f32.xlu1 %v131_v49  ;;  %vm831_vm11 = vcmask 786112   ;;  %vm838_vm12 = vcmask 851712   ;;  %vm845_vm13 = vcmask 917312   ;;  %vm852_vm14 = vcmask 982912   ;;  %p970_p3 = por %p969_p2, %p968_p1 }
  0x1e   :  { %129 = vadd.xlane.f32.xlu0 %v128_v50  ;;  %vm859_vm15 = vcmask 1048512   ;;  %vm940_vm0 = vcmask 1041409  }
  0x1f   :  { %p971_p4 = pnand %p970_p3, %p964_p0 }
  0x21   :  { %138 = vadd.xlane.f32.xlu1 %v137_v55 }
  0x22   :  { %135 = vadd.xlane.f32.xlu0 %v134_v56 }
  0x25   :  { %144 = vadd.xlane.f32.xlu1 %v143_v61 }
  0x26   :  { %141 = vadd.xlane.f32.xlu0 %v140_v62 }
  0x29   :  { %150 = vadd.xlane.f32.xlu1 %v149_v4 }
  0x2a   :  { %147 = vadd.xlane.f32.xlu0 %v146_v5 }
  0x2d   :  { %156 = vadd.xlane.f32.xlu1 %v155_v10 }
  0x2e   :  { %153 = vadd.xlane.f32.xlu0 %v152_v11 }
  0x31   :  { %162 = vadd.xlane.f32.xlu1 %v161_v16 }
  0x32   :  { %159 = vadd.xlane.f32.xlu0 %v158_v17 }
  0x35   :  { %168 = vadd.xlane.f32.xlu1 %v167_v22 }
  0x36   :  { %165 = vadd.xlane.f32.xlu0 %v164_v23 }
  0x39   :  { %174 = vadd.xlane.f32.xlu1 %v173_v28 }
  0x3a   :  { %171 = vadd.xlane.f32.xlu0 %v170_v29 }
  0x3d   :  { %180 = vadd.xlane.f32.xlu1 %v179_v37 }
  0x3e   :  { %177 = vadd.xlane.f32.xlu0 %v176_v39 }
  0x41   :  { %186 = vadd.xlane.f32.xlu1 %v185_v42 }
  0x42   :  { %183 = vadd.xlane.f32.xlu0 %v182_v43 }
  0x52   :  { %233 = vbcast.lane.b32.xlu1 %v227_v48, 264 }
  0x56   :  { %237 = vbcast.lane.b32.xlu1 %v227_v48, 272 }
  0x58   :  { %229 = vbcast.lane.b32.xlu0 %v227_v48, 256 }
  0x5a   :  { %241 = vbcast.lane.b32.xlu1 %v227_v48, 280 }
  0x5c   :  { %245 = vbcast.lane.b32.xlu0 %v227_v48, 288 }
  0x5e   :  { %249 = vbcast.lane.b32.xlu1 %v227_v48, 296 }
  0x60   :  { %253 = vbcast.lane.b32.xlu0 %v227_v48, 304 }
  0x62   :  { %257 = vbcast.lane.b32.xlu1 %v227_v48, 312 }
  0x64   :  { %261 = vbcast.lane.b32.xlu0 %v227_v48, 320 }
  0x66   :  { %265 = vbcast.lane.b32.xlu1 %v227_v48, 328 }
  0x68   :  { %269 = vbcast.lane.b32.xlu0 %v227_v48, 336 }
  0x6a   :  { %273 = vbcast.lane.b32.xlu1 %v227_v48, 344 }
  0x6c   :  { %277 = vbcast.lane.b32.xlu0 %v227_v48, 352 }
  0x6e   :  { %281 = vbcast.lane.b32.xlu1 %v227_v48, 360 }
  0x70   :  { %285 = vbcast.lane.b32.xlu0 %v227_v48, 368 }
  0x72   :  { %289 = vbcast.lane.b32.xlu1 %v227_v48, 376 }
  0x74   :  { %296 = vbcast.lane.b32.xlu0 %v294_v1, 256 }
  0x76   :  { %300 = vbcast.lane.b32.xlu1 %v294_v1, 264 }
  0x78   :  { %304 = vbcast.lane.b32.xlu0 %v294_v1, 272 }
  0x7a   :  { %308 = vbcast.lane.b32.xlu1 %v294_v1, 280 }
  0x7c   :  { %312 = vbcast.lane.b32.xlu0 %v294_v1, 288 }
  0x7e   :  { %316 = vbcast.lane.b32.xlu1 %v294_v1, 296 }
  0x80   :  { %320 = vbcast.lane.b32.xlu0 %v294_v1, 304 }
  0x82   :  { %324 = vbcast.lane.b32.xlu1 %v294_v1, 312 }
  0x84   :  { %328 = vbcast.lane.b32.xlu0 %v294_v1, 320 }
  0x86   :  { %332 = vbcast.lane.b32.xlu1 %v294_v1, 328 }
  0x88   :  { %336 = vbcast.lane.b32.xlu0 %v294_v1, 336 }
  0x8a   :  { %340 = vbcast.lane.b32.xlu1 %v294_v1, 344 }
  0x8c   :  { %344 = vbcast.lane.b32.xlu0 %v294_v1, 352 }
  0x8e   :  { %348 = vbcast.lane.b32.xlu1 %v294_v1, 360 }
  0x90   :  { %352 = vbcast.lane.b32.xlu0 %v294_v1, 368 }
  0x92   :  { %v1203_v46 = vpop.xlane.xlu1 %99  ;;  %356 = vbcast.lane.b32.xlu1 %v294_v1, 376 }
  0x93   :  { %v1205_v47 = vpop.xlane.xlu0 %93 }
  0x94   :  { %429 = vbcast.lane.b32.xlu0 %v1112_v52, 256 }
  0x96   :  { %v1208_v49 = vpop.xlane.xlu1 %102  ;;  %433 = vbcast.lane.b32.xlu1 %v1112_v52, 264 }
  0x97   :  { %v1210_v50 = vpop.xlane.xlu0 %96 }
  0x98   :  { %437 = vbcast.lane.b32.xlu0 %v1112_v52, 272 }
  0x9a   :  { %v1214_v51 = vpop.xlane.xlu1 %108  ;;  %441 = vbcast.lane.b32.xlu1 %v1112_v52, 280 }
  0x9b   :  { %v1216_v53 = vpop.xlane.xlu0 %105 }
  0x9c   :  { %445 = vbcast.lane.b32.xlu0 %v1112_v52, 288 }
  0x9e   :  { %v1220_v54 = vpop.xlane.xlu1 %114  ;;  %449 = vbcast.lane.b32.xlu1 %v1112_v52, 296 }
  0x9f   :  { %v1222_v55 = vpop.xlane.xlu0 %111 }
  0xa0   :  { %453 = vbcast.lane.b32.xlu0 %v1112_v52, 304 }
  0xa2   :  { %v1226_v56 = vpop.xlane.xlu1 %120  ;;  %457 = vbcast.lane.b32.xlu1 %v1112_v52, 312 }
  0xa3   :  { %v1228_v57 = vpop.xlane.xlu0 %117 }
  0xa4   :  { %461 = vbcast.lane.b32.xlu0 %v1112_v52, 320 }
  0xa6   :  { %v1232_v58 = vpop.xlane.xlu1 %126  ;;  %465 = vbcast.lane.b32.xlu1 %v1112_v52, 328 }
  0xa7   :  { %v1234_v59 = vpop.xlane.xlu0 %123 }
  0xa8   :  { %469 = vbcast.lane.b32.xlu0 %v1112_v52, 336 }
  0xaa   :  { %v133_v60 = vpop.xlane.xlu1 %132  ;;  %473 = vbcast.lane.b32.xlu1 %v1112_v52, 344 }
  0xab   :  { %v130_v61 = vpop.xlane.xlu0 %129  ;;  %v202_v39 = vadd.f32 %v1281_v12, %v133_v60 }
  0xac   :  { %477 = vbcast.lane.b32.xlu0 %v1112_v52, 352  ;;  %v201_v29 = vadd.f32 %v1281_v12, %v130_v61 }
  0xae   :  { %v139_v62 = vpop.xlane.xlu1 %138  ;;  %481 = vbcast.lane.b32.xlu1 %v1112_v52, 360 }
  0xaf   :  { %v136_v63 = vpop.xlane.xlu0 %135  ;;  %v204_v43 = vadd.f32 %v1281_v12, %v139_v62 }
  0xb0   :  { %485 = vbcast.lane.b32.xlu0 %v1112_v52, 368  ;;  %v203_v34 = vadd.f32 %v1281_v12, %v136_v63 }
  0xb2   :  { %v1242_v0 = vpop.xlane.xlu1 %144  ;;  %489 = vbcast.lane.b32.xlu1 %v1112_v52, 376 }
  0xb3   :  { %v1244_v2 = vpop.xlane.xlu0 %141 }
  0xb4   :  { %496 = vbcast.lane.b32.xlu0 %v1196_v41, 256 }
  0xb6   :  { %v1248_v3 = vpop.xlane.xlu1 %150  ;;  %500 = vbcast.lane.b32.xlu1 %v1196_v41, 264 }
  0xb7   :  { %v1250_v4 = vpop.xlane.xlu0 %147 }
  0xb8   :  { %504 = vbcast.lane.b32.xlu0 %v1196_v41, 272 }
  0xba   :  { %v1254_v5 = vpop.xlane.xlu1 %156  ;;  %508 = vbcast.lane.b32.xlu1 %v1196_v41, 280 }
  0xbb   :  { %v1256_v6 = vpop.xlane.xlu0 %153 }
  0xbc   :  { %512 = vbcast.lane.b32.xlu0 %v1196_v41, 288 }
  0xbe   :  { %v1260_v7 = vpop.xlane.xlu1 %162  ;;  %516 = vbcast.lane.b32.xlu1 %v1196_v41, 296 }
  0xbf   :  { %v1262_v52 = vpop.xlane.xlu0 %159 }
  0xc0   :  { %520 = vbcast.lane.b32.xlu0 %v1196_v41, 304 }
  0xc2   :  { %v1266_v8 = vpop.xlane.xlu1 %168  ;;  %524 = vbcast.lane.b32.xlu1 %v1196_v41, 312 }
  0xc3   :  { %v1268_v9 = vpop.xlane.xlu0 %165 }
  0xc4   :  { %528 = vbcast.lane.b32.xlu0 %v1196_v41, 320 }
  0xc6   :  { %v1272_v10 = vpop.xlane.xlu1 %174  ;;  %532 = vbcast.lane.b32.xlu1 %v1196_v41, 328 }
  0xc7   :  { %v1274_v11 = vpop.xlane.xlu0 %171 }
  0xc8   :  { %536 = vbcast.lane.b32.xlu0 %v1196_v41, 336 }
  0xca   :  { %v181_v13 = vpop.xlane.xlu1 %180  ;;  %540 = vbcast.lane.b32.xlu1 %v1196_v41, 344 }
  0xcb   :  { %v178_v14 = vpop.xlane.xlu0 %177  ;;  %v218_v31 = vadd.f32 %v1281_v12, %v181_v13  ;;  %v191_v13 = vadd.f32 %v1281_v12, %v1203_v46 }
  0xcc   :  { %v217_v15 = vadd.f32 %v1281_v12, %v178_v14  ;;  %544 = vbcast.lane.b32.xlu0 %v1196_v41, 352 }
  0xce   :  { %v187_v16 = vpop.xlane.xlu1 %186  ;;  %548 = vbcast.lane.b32.xlu1 %v1196_v41, 360 }
  0xcf   :  { %v184_v17 = vpop.xlane.xlu0 %183 }
  0xd0   :  { %v219_v18 = vadd.f32 %v1281_v12, %v184_v17  ;;  %552 = vbcast.lane.b32.xlu0 %v1196_v41, 368 }
  0xd2   :  { %v234_v19 = vpop.permute.xlu1 %233  ;;  %556 = vbcast.lane.b32.xlu1 %v1196_v41, 376 }
  0xd3   :  { %v230_v20 = vpop.permute.xlu0 %229 }
  0xd6   :  { %v238_v21 = vpop.permute.xlu1 %237 }
  0xd7   :  { %v1290_v22 = vpop.permute.xlu0 %245 }
  0xda   :  { %v242_v23 = vpop.permute.xlu1 %241 }
  0xdb   :  { %v1292_v24 = vpop.permute.xlu0 %253 }
  0xde   :  { %v1294_v25 = vpop.permute.xlu1 %249 }
  0xdf   :  { %v1296_v26 = vpop.permute.xlu0 %261 }
  0xe2   :  { %v1298_v27 = vpop.permute.xlu1 %257 }
  0xe3   :  { %v1300_v28 = vpop.permute.xlu0 %269 }
  0xe6   :  { %v1303_v30 = vpop.permute.xlu1 %265 }
  0xe7   :  { %v278_v32 = vpop.permute.xlu0 %277 }
  0xe8   :  { %v1305_v33 = vmul.f32 %v278_v32, %v201_v29 }
  0xea   :  { %1563 = vst [vmem:[#allocation7_spill] sm:$0xff] %v1305_v33  ;;  %v1308_v35 = vpop.permute.xlu1 %273 }
  0xeb   :  { %1564 = vst [vmem:[#allocation8_spill] sm:$0xff] %v1308_v35  ;;  %v286_v36 = vpop.permute.xlu0 %285  ;;  %v220_v35 = vadd.f32 %v1281_v12, %v187_v16 }
  0xec   :  { %v1310_v37 = vmul.f32 %v286_v36, %v203_v34 }
  0xee   :  { %1565 = vst [vmem:[#allocation9_spill] sm:$0xff] %v1310_v37  ;;  %v282_v40 = vpop.permute.xlu1 %281 }
  0xef   :  { %v1313_v41 = vpop.permute.xlu0 %296  ;;  %v1315_v42 = vmul.f32 %v282_v40, %v202_v39 }
  0xf1   :  { %1566 = vst [vmem:[#allocation10_spill] sm:$0xff] %v1315_v42 }
  0xf2   :  { %v290_v44 = vpop.permute.xlu1 %289 }
  0xf3   :  { %v1318_v48 = vpop.permute.xlu0 %304  ;;  %v1320_v1 = vmul.f32 %v290_v44, %v204_v43  ;;  %v189_v43 = vadd.f32 %v1281_v12, %v1205_v47 }
  0xf5   :  { %1567 = vst [vmem:[#allocation11_spill] sm:$0xff] %v1320_v1  ;;  %v390_v38 = vmul.f32 %v230_v20, %v189_v43  ;;  %v392_v20 = vmul.f32 %v238_v21, %v191_v13  ;;  %v195_v43 = vadd.f32 %v1281_v12, %v1222_v55 }
  0xf6   :  { %v1322_v45 = vpop.permute.xlu1 %300 }
  0xf7   :  { %v1324_v61 = vpop.permute.xlu0 %312 }
  0xfa   :  { %v1326_v63 = vpop.permute.xlu1 %308 }
  0xfb   :  { %v1328_v14 = vpop.permute.xlu0 %320 }
  0xfe   :  { %v1330_v60 = vpop.permute.xlu1 %316 }
  0xff   :  { %v1332_v17 = vpop.permute.xlu0 %328 }
 0x102   :  { %v1334_v29 = vpop.permute.xlu1 %324 }
 0x103   :  { %v1336_v62 = vpop.permute.xlu0 %336 }
 0x106   :  { %v1338_v32 = vpop.permute.xlu1 %332 }
 0x107   :  { %v345_v34 = vpop.permute.xlu0 %344 }
 0x108   :  { %v1340_v36 = vmul.f32 %v345_v34, %v217_v15 }
 0x10a   :  { %1568 = vst [vmem:[#allocation12_spill] sm:$0xff] %v1340_v36  ;;  %v1342_v39 = vpop.permute.xlu1 %340  ;;  %v190_v36 = vadd.f32 %v1281_v12, %v1210_v50  ;;  %v194_v50 = vadd.f32 %v1281_v12, %v1214_v51 }
 0x10b   :  { %1569 = vst [vmem:[#allocation13_spill] sm:$0xff] %v1342_v39  ;;  %v353_v40 = vpop.permute.xlu0 %352 }
 0x10c   :  { %v1346_v44 = vmul.f32 %v353_v40, %v219_v18  ;;  %v391_v47 = vmul.f32 %v234_v19, %v190_v36  ;;  %v193_v19 = vadd.f32 %v1281_v12, %v1216_v53  ;;  %v395_v46 = vmul.f32 %v1294_v25, %v194_v50 }
 0x10d   :  { %v396_v53 = vmul.f32 %v1292_v24, %v195_v43  ;;  %v207_v50 = vadd.f32 %v1281_v12, %v1250_v4 }
 0x10e   :  { %v349_v1 = vpop.permute.xlu1 %348  ;;  %v394_v36 = vmul.f32 %v1290_v22, %v193_v19 }
 0x10f   :  { %v430_v37 = vpop.permute.xlu0 %429  ;;  %v1349_v42 = vmul.f32 %v349_v1, %v218_v31  ;;  %v192_v31 = vadd.f32 %v1281_v12, %v1208_v49  ;;  %v408_v19 = vmul.f32 %v1318_v48, %v207_v50  ;;  %v208_v48 = vadd.f32 %v1281_v12, %v1248_v3 }
 0x110   :  { %v590_v33 = vsub.f32 %v390_v38, %v430_v37 }
 0x111   :  { %v393_v16 = vmul.f32 %v242_v23, %v192_v31  ;;  %v196_v23 = vadd.f32 %v1281_v12, %v1220_v54  ;;  %v199_v31 = vadd.f32 %v1281_v12, %v1234_v59 }
 0x112   :  { %655 = vperm.xlu0 %961, %v590_v33   ;;  %v357_v15 = vpop.permute.xlu1 %356 }
 0x113   :  { %v438_v34 = vpop.permute.xlu0 %437  ;;  %v1354_v39 = vmul.f32 %v357_v15, %v220_v35 }
 0x114   :  { %v592_v35 = vsub.f32 %v392_v20, %v438_v34  ;;  %v397_v34 = vmul.f32 %v1298_v27, %v196_v23  ;;  %v211_v23 = vadd.f32 %v1281_v12, %v1262_v52 }
 0x116   :  { %v434_v18 = vpop.permute.xlu1 %433 }
 0x117   :  { %v446_v40 = vpop.permute.xlu0 %445  ;;  %v591_v38 = vsub.f32 %v391_v47, %v434_v18  ;;  %v198_v47 = vadd.f32 %v1281_v12, %v1226_v56  ;;  %v197_v18 = vadd.f32 %v1281_v12, %v1228_v57  ;;  %v400_v56 = vmul.f32 %v1300_v28, %v199_v31  ;;  %v1570_v31 = vld [vmem:[#allocation8_spill] sm:$0xff] }
 0x118   :  { %v594_v51 = vsub.f32 %v394_v36, %v446_v40 }
 0x119   :  { %658 = vperm.xlu1 %962, %v591_v38   ;;  %v398_v55 = vmul.f32 %v1296_v26, %v197_v18  ;;  %v399_v40 = vmul.f32 %v1303_v30, %v198_v47  ;;  %v205_v26 = vadd.f32 %v1281_v12, %v1244_v2  ;;  %v206_v2 = vadd.f32 %v1281_v12, %v1242_v0 }
 0x11a   :  { %v442_v33 = vpop.permute.xlu1 %441  ;;  %v409_v0 = vmul.f32 %v1326_v63, %v208_v48  ;;  %v215_v47 = vadd.f32 %v1281_v12, %v1274_v11 }
 0x11b   :  { %v454_v37 = vpop.permute.xlu0 %453  ;;  %v593_v1 = vsub.f32 %v393_v16, %v442_v33  ;;  %v406_v33 = vmul.f32 %v1313_v41, %v205_v26  ;;  %v209_v41 = vadd.f32 %v1281_v12, %v1256_v6  ;;  %v412_v6 = vmul.f32 %v1328_v14, %v211_v23 }
 0x11c   :  { %v596_v54 = vsub.f32 %v396_v53, %v454_v37  ;;  %v213_v53 = vadd.f32 %v1281_v12, %v1268_v9 }
 0x11d   :  { %664 = vperm.xlu0 %961, %v593_v1   ;;  %661 = vperm.xlu1 %962, %v592_v35  }
 0x11e   :  { %v450_v49 = vpop.permute.xlu1 %449 }
 0x11f   :  { %v462_v21 = vpop.permute.xlu0 %461  ;;  %v595_v15 = vsub.f32 %v395_v46, %v450_v49  ;;  %v407_v46 = vmul.f32 %v1322_v45, %v206_v2  ;;  %v410_v49 = vmul.f32 %v1324_v61, %v209_v41  ;;  %v210_v61 = vadd.f32 %v1281_v12, %v1254_v5 }
 0x120   :  { %v598_v38 = vsub.f32 %v398_v55, %v462_v21 }
 0x121   :  { %670 = vperm.xlu0 %961, %v595_v15   ;;  %667 = vperm.xlu1 %962, %v594_v51   ;;  %v411_v52 = vmul.f32 %v1330_v60, %v210_v61 }
 0x122   :  { %v458_v22 = vpop.permute.xlu1 %457 }
 0x123   :  { %v470_v25 = vpop.permute.xlu0 %469  ;;  %v597_v13 = vsub.f32 %v397_v34, %v458_v22  ;;  %v414_v22 = vmul.f32 %v1332_v17, %v213_v53 }
 0x124   :  { %v600_v30 = vsub.f32 %v400_v56, %v470_v25  ;;  %v212_v25 = vadd.f32 %v1281_v12, %v1260_v7 }
 0x125   :  { %676 = vperm.xlu0 %961, %v597_v13   ;;  %673 = vperm.xlu1 %962, %v596_v54   ;;  %v416_v54 = vmul.f32 %v1336_v62, %v215_v47  ;;  %v214_v13 = vadd.f32 %v1281_v12, %v1266_v8 }
 0x126   :  { %v466_v24 = vpop.permute.xlu1 %465  ;;  %v413_v9 = vmul.f32 %v1334_v29, %v212_v25  ;;  %v216_v29 = vadd.f32 %v1281_v12, %v1272_v10  ;;  %v1574_v10 = vld [vmem:[#allocation10_spill] sm:$0xff] }
 0x127   :  { %v1378_v27 = vpop.permute.xlu0 %477  ;;  %v599_v20 = vsub.f32 %v399_v40, %v466_v24  ;;  %v415_v7 = vmul.f32 %v1338_v32, %v214_v13  ;;  %v200_v24 = vadd.f32 %v1281_v12, %v1232_v58  ;;  %v1573_v58 = vld [vmem:[#allocation12_spill] sm:$0xff] }
 0x129   :  { %682 = vperm.xlu0 %961, %v599_v20   ;;  %679 = vperm.xlu1 %962, %v598_v38   ;;  %v401_v38 = vmul.f32 %v1570_v31, %v200_v24  ;;  %v1571_v20 = vld [vmem:[#allocation13_spill] sm:$0xff] }
 0x12a   :  { %v1383_v57 = vpop.permute.xlu1 %473  ;;  %v417_v56 = vmul.f32 %v1571_v20, %v216_v29 }
 0x12b   :  { %v1385_v16 = vpop.permute.xlu0 %485  ;;  %v601_v26 = vsub.f32 %v401_v38, %v1383_v57  ;;  %v1575_v57 = vld [vmem:[#allocation9_spill] sm:$0xff] }
 0x12c   :  { %v604_v2 = vsub.f32 %v1575_v57, %v1385_v16 }
 0x12d   :  { %685 = vperm.xlu1 %962, %v600_v30  }
 0x12e   :  { %v1390_v37 = vpop.permute.xlu1 %481 }
 0x12f   :  { %v497_v59 = vpop.permute.xlu0 %496  ;;  %v603_v12 = vsub.f32 %v1574_v10, %v1390_v37 }
 0x130   :  { %v606_v28 = vsub.f32 %v406_v33, %v497_v59  ;;  %v1572_v33 = vld [vmem:[#allocation7_spill] sm:$0xff] }
 0x131   :  { %v602_v59 = vsub.f32 %v1572_v33, %v1378_v27  ;;  %v1576_v27 = vld [vmem:[#allocation11_spill] sm:$0xff] }
 0x132   :  { %703 = vperm.xlu0 %961, %v606_v28   ;;  %v1395_v35 = vpop.permute.xlu1 %489 }
 0x133   :  { %v505_v1 = vpop.permute.xlu0 %504 }
 0x134   :  { %v608_v36 = vsub.f32 %v408_v19, %v505_v1 }
 0x136   :  { %709 = vperm.xlu0 %961, %v608_v36   ;;  %v501_v4 = vpop.permute.xlu1 %500 }
 0x137   :  { %v513_v21 = vpop.permute.xlu0 %512  ;;  %v607_v43 = vsub.f32 %v407_v46, %v501_v4  ;;  %v605_v46 = vsub.f32 %v1576_v27, %v1395_v35 }
 0x138   :  { %v610_v51 = vsub.f32 %v410_v49, %v513_v21 }
 0x139   :  { %706 = vperm.xlu1 %962, %v607_v43  }
 0x13a   :  { %715 = vperm.xlu0 %961, %v610_v51   ;;  %v509_v45 = vpop.permute.xlu1 %508 }
 0x13b   :  { %v521_v15 = vpop.permute.xlu0 %520  ;;  %v609_v3 = vsub.f32 %v409_v0, %v509_v45 }
 0x13c   :  { %v612_v34 = vsub.f32 %v412_v6, %v521_v15  ;;  %v1577_v15 = vlaneseq }
 0x13d   :  { %712 = vperm.xlu1 %962, %v609_v3  }
 0x13e   :  { %721 = vperm.xlu0 %961, %v612_v34   ;;  %v517_v63 = vpop.permute.xlu1 %516  ;;  %v1458_v61 = vand.u32 127, %v1577_v15 }
 0x13f   :  { %v529_v14 = vpop.permute.xlu0 %528  ;;  %v611_v5 = vsub.f32 %v411_v52, %v517_v63  ;;  %v1578_v63 = vld [vmem:[#allocation6_spill] sm:$0xff] }
 0x140   :  { %v614_v18 = vsub.f32 %v414_v22, %v529_v14  ;;  %v756_v34 = vadd.s32 4294967288, %v1458_v61  ;;  %v763_v52 = vadd.s32 4294967280, %v1458_v61  ;;  %v770_v25 = vadd.s32 4294967272, %v1458_v61 }
 0x141   :  { %718 = vperm.xlu1 %962, %v611_v5   ;;  %v777_v5 = vadd.s32 4294967264, %v1458_v61  ;;  %v798_v33 = vadd.s32 4294967240, %v1458_v61 }
 0x142   :  { %727 = vperm.xlu0 %961, %v614_v18   ;;  %v525_v60 = vpop.permute.xlu1 %524  ;;  %v759_v14 = vsub.s32 %v756_v34, %v1578_v63  ;;  %v766_v47 = vsub.s32 %v763_v52, %v1578_v63  ;;  %v840_v52 = vadd.s32 4294967192, %v1458_v61 }
 0x143   :  { %v537_v17 = vpop.permute.xlu0 %536  ;;  %v613_v55 = vsub.f32 %v413_v9, %v525_v60  ;;  %v754_v9 = vsub.s32 %v1458_v61, %v1578_v63  ;;  %v784_v60 = vadd.s32 4294967256, %v1458_v61  ;;  %v780_v24 = vsub.s32 %v777_v5, %v1578_v63 }
 0x144   :  { %v616_v40 = vsub.f32 %v416_v54, %v537_v17  ;;  %v801_v27 = vsub.s32 %v798_v33, %v1578_v63 }
 0x145   :  { %724 = vperm.xlu1 %962, %v613_v55   ;;  %v773_v55 = vsub.s32 %v770_v25, %v1578_v63  ;;  %v787_v38 = vsub.s32 %v784_v60, %v1578_v63 }
 0x146   :  { %733 = vperm.xlu0 %961, %v616_v40   ;;  %v533_v11 = vpop.permute.xlu1 %532  ;;  %v791_v40 = vadd.s32 4294967248, %v1458_v61 }
 0x147   :  { %v615_v62 = vsub.f32 %v415_v7, %v533_v11  ;;  %v545_v32 = vpop.permute.xlu0 %544 }
 0x148   :  { %v618_v50 = vsub.f32 %v1573_v58, %v545_v32  ;;  %v794_v32 = vsub.s32 %v791_v40, %v1578_v63  ;;  %v854_v40 = vadd.s32 4294967176, %v1458_v61 }
 0x149   :  { %730 = vperm.xlu1 %962, %v615_v62  }
 0x14a   :  { %v541_v8 = vpop.permute.xlu1 %540 }
 0x14b   :  { %v617_v30 = vsub.f32 %v417_v56, %v541_v8  ;;  %v553_v1 = vpop.permute.xlu0 %552 }
 0x14c   :  { %v620_v41 = vsub.f32 %v1346_v44, %v553_v1 }
 0x14d   :  { %688 = vperm.xlu1 %962, %v601_v26   ;;  %736 = vperm.xlu0 %961, %v617_v30  }
 0x14e   :  { %v549_v28 = vpop.permute.xlu1 %548 }
 0x14f   :  { %v619_v19 = vsub.f32 %v1349_v42, %v549_v28 }
 0x151   :  { %691 = vperm.xlu1 %962, %v602_v59   ;;  %739 = vperm.xlu0 %961, %v618_v50   ;;  %v805_v50 = vadd.s32 4294967232, %v1458_v61 }
 0x152   :  { %v557_v36 = vpop.permute.xlu1 %556 }
 0x153   :  { %v621_v49 = vsub.f32 %v1354_v39, %v557_v36 }
 0x155   :  { %694 = vperm.xlu1 %962, %v603_v12   ;;  %742 = vperm.xlu0 %961, %v619_v19   ;;  %v812_v19 = vadd.s32 4294967224, %v1458_v61 }
 0x159   :  { %697 = vperm.xlu1 %962, %v604_v2   ;;  %745 = vperm.xlu0 %961, %v620_v41  }
 0x15d   :  { %700 = vperm.xlu1 %962, %v605_v46   ;;  %748 = vperm.xlu0 %961, %v621_v49   ;;  %v819_v46 = vadd.s32 4294967216, %v1458_v61 }
 0x15f   :  { %v822_v34 = vsub.s32 %v819_v46, %v1578_v63 }
 0x191   :  { %v656_v37 = vpop.permute.xlu0 %655 }
 0x192   :  { %v755_v29 = vrot.slane %v656_v37, %v754_v9 }
 0x198   :  { %v659_v42 = vpop.permute.xlu1 %658 }
 0x199   :  { %v760_v13 = vrot.slane %v659_v42, %v759_v14  ;;  %v808_v42 = vsub.s32 %v805_v50, %v1578_v63 }
 0x19b   :  { %v762_v26 = vsel %vm761_vm1, %v760_v13, %v755_v29 }
 0x19c   :  { %v662_v4 = vpop.permute.xlu1 %661  ;;  %v665_v21 = vpop.permute.xlu0 %664 }
 0x19d   :  { %v767_v11 = vrot.slane %v662_v4, %v766_v47  ;;  %v774_v30 = vrot.slane %v665_v21, %v773_v55 }
 0x19f   :  { %v769_v59 = vsel %vm768_vm2, %v767_v11, %v762_v26 }
 0x1a0   :  { %v1443_v48 = vpop.permute.xlu0 %670  ;;  %v1445_v23 = vpop.permute.xlu1 %667  ;;  %v776_v41 = vsel %vm775_vm3, %v774_v30, %v769_v59 }
 0x1a1   :  { %v781_v58 = vrot.slane %v1445_v23, %v780_v24  ;;  %v788_v36 = vrot.slane %v1443_v48, %v787_v38  ;;  %v815_v48 = vsub.s32 %v812_v19, %v1578_v63 }
 0x1a3   :  { %v783_v49 = vsel %vm782_vm4, %v781_v58, %v776_v41 }
 0x1a4   :  { %v1447_v16 = vpop.permute.xlu0 %676  ;;  %v1449_v44 = vpop.permute.xlu1 %673  ;;  %v790_v15 = vsel %vm789_vm5, %v788_v36, %v783_v49 }
 0x1a5   :  { %v795_v37 = vrot.slane %v1449_v44, %v794_v32 }
 0x1a8   :  { %v1451_v43 = vpop.permute.xlu0 %682  ;;  %v1453_v51 = vpop.permute.xlu1 %679 }
 0x1a9   :  { %v816_v13 = vrot.slane %v1451_v43, %v815_v48 }
 0x1ac   :  { %v1455_v39 = vpop.permute.xlu1 %685 }
 0x1ad   :  { %v823_v11 = vrot.slane %v1455_v39, %v822_v34 }
 0x1b1   :  { %v704_v35 = vpop.permute.xlu0 %703 }
 0x1b2   :  { %v864_v7 = vrot.slane %v704_v35, %v754_v9  ;;  %v826_v35 = vadd.s32 4294967208, %v1458_v61 }
 0x1b4   :  { %v829_v9 = vsub.s32 %v826_v35, %v1578_v63 }
 0x1b5   :  { %v710_v0 = vpop.permute.xlu0 %709 }
 0x1b6   :  { %v873_v20 = vrot.slane %v710_v0, %v766_v47 }
 0x1b8   :  { %v707_v6 = vpop.permute.xlu1 %706 }
 0x1b9   :  { %v716_v45 = vpop.permute.xlu0 %715  ;;  %v868_v54 = vrot.slane %v707_v6, %v759_v14  ;;  %v833_v6 = vadd.s32 4294967200, %v1458_v61  ;;  %v809_v14 = vrot.slane %v1453_v51, %v808_v42 }
 0x1ba   :  { %v883_v1 = vrot.slane %v716_v45, %v780_v24 }
 0x1bb   :  { %v869_v62 = vsel %vm761_vm1, %v868_v54, %v864_v7  ;;  %v836_v54 = vsub.s32 %v833_v6, %v1578_v63 }
 0x1bc   :  { %v713_v53 = vpop.permute.xlu1 %712  ;;  %v874_v28 = vsel %vm768_vm2, %v873_v20, %v869_v62 }
 0x1bd   :  { %v1460_v3 = vpop.permute.xlu0 %721  ;;  %v878_v31 = vrot.slane %v713_v53, %v773_v55  ;;  %v802_v53 = vrot.slane %v1447_v16, %v801_v27  ;;  %v843_v55 = vsub.s32 %v840_v52, %v1578_v63 }
 0x1be   :  { %v893_v0 = vrot.slane %v1460_v3, %v794_v32  ;;  %v847_v3 = vadd.s32 4294967184, %v1458_v61  ;;  %v857_v32 = vsub.s32 %v854_v40, %v1578_v63 }
 0x1bf   :  { %v879_v10 = vsel %vm775_vm3, %v878_v31, %v874_v28 }
 0x1c0   :  { %v719_v22 = vpop.permute.xlu1 %718  ;;  %v884_v4 = vsel %vm782_vm4, %v883_v1, %v879_v10 }
 0x1c1   :  { %v1468_v18 = vpop.permute.xlu0 %727  ;;  %v888_v12 = vrot.slane %v719_v22, %v787_v38  ;;  %v797_v22 = vsel %vm796_vm6, %v795_v37, %v790_v15 }
 0x1c2   :  { %v903_v16 = vrot.slane %v1468_v18, %v808_v42  ;;  %v804_v51 = vsel %vm803_vm7, %v802_v53, %v797_v22  ;;  %v850_v18 = vsub.s32 %v847_v3, %v1578_v63 }
 0x1c3   :  { %v889_v21 = vsel %vm789_vm5, %v888_v12, %v884_v4  ;;  %v811_v7 = vsel %vm810_vm8, %v809_v14, %v804_v51 }
 0x1c4   :  { %v1473_v17 = vpop.permute.xlu1 %724  ;;  %v894_v25 = vsel %vm796_vm6, %v893_v0, %v889_v21  ;;  %v818_v39 = vsel %vm817_vm9, %v816_v13, %v811_v7 }
 0x1c5   :  { %v1479_v56 = vpop.permute.xlu0 %733  ;;  %v898_v23 = vrot.slane %v1473_v17, %v801_v27  ;;  %v825_v33 = vsel %vm824_vm10, %v823_v11, %v818_v39 }
 0x1c6   :  { %v913_v43 = vrot.slane %v1479_v56, %v822_v34 }
 0x1c7   :  { %v899_v47 = vsel %vm803_vm7, %v898_v23, %v894_v25 }
 0x1c8   :  { %v1481_v8 = vpop.permute.xlu1 %730  ;;  %v904_v24 = vsel %vm810_vm8, %v903_v16, %v899_v47 }
 0x1c9   :  { %v908_v5 = vrot.slane %v1481_v8, %v815_v48 }
 0x1cb   :  { %v909_v29 = vsel %vm817_vm9, %v908_v5, %v904_v24 }
 0x1cc   :  { %v1489_v57 = vpop.permute.xlu1 %688  ;;  %v1491_v2 = vpop.permute.xlu0 %736  ;;  %v914_v59 = vsel %vm824_vm10, %v913_v43, %v909_v29 }
 0x1cd   :  { %v830_v62 = vrot.slane %v1489_v57, %v829_v9  ;;  %v918_v31 = vrot.slane %v1491_v2, %v829_v9 }
 0x1cf   :  { %v832_v28 = vsel %vm831_vm11, %v830_v62, %v825_v33  ;;  %v919_v56 = vsel %vm831_vm11, %v918_v31, %v914_v59 }
 0x1d0   :  { %v692_v45 = vpop.permute.xlu1 %691  ;;  %v740_v44 = vpop.permute.xlu0 %739 }
 0x1d1   :  { %v837_v38 = vrot.slane %v692_v45, %v836_v54  ;;  %v923_v20 = vrot.slane %v740_v44, %v836_v54 }
 0x1d3   :  { %v839_v10 = vsel %vm838_vm12, %v837_v38, %v832_v28  ;;  %v924_v12 = vsel %vm838_vm12, %v923_v20, %v919_v56 }
 0x1d4   :  { %v695_v60 = vpop.permute.xlu1 %694  ;;  %v743_v17 = vpop.permute.xlu0 %742 }
 0x1d5   :  { %v844_v26 = vrot.slane %v695_v60, %v843_v55  ;;  %v928_v30 = vrot.slane %v743_v17, %v843_v55 }
 0x1d7   :  { %v846_v63 = vsel %vm845_vm13, %v844_v26, %v839_v10  ;;  %v929_v57 = vsel %vm845_vm13, %v928_v30, %v924_v12 }
 0x1d8   :  { %v698_v61 = vpop.permute.xlu1 %697  ;;  %v746_v8 = vpop.permute.xlu0 %745 }
 0x1d9   :  { %v851_v58 = vrot.slane %v698_v61, %v850_v18  ;;  %v933_v50 = vrot.slane %v746_v8, %v850_v18 }
 0x1db   :  { %v853_v36 = vsel %vm852_vm14, %v851_v58, %v846_v63  ;;  %v934_v27 = vsel %vm852_vm14, %v933_v50, %v929_v57 }
 0x1dc   :  { %v701_v19 = vpop.permute.xlu1 %700  ;;  %v749_v1 = vpop.permute.xlu0 %748 }
 0x1dd   :  { %v858_v2 = vrot.slane %v701_v19, %v857_v32  ;;  %v938_v41 = vrot.slane %v749_v1, %v857_v32 }
 0x1df   :  { %v860_v46 = vsel %vm859_vm15, %v858_v2, %v853_v36  ;;  %v939_v49 = vsel %vm859_vm15, %v938_v41, %v934_v27 }
 0x1e0   :  { %v941_v37 = vsel %vm940_vm0, %v939_v49, %v860_v46 }
 0x1e1   :  { %943 = vst [vmem:[#allocation3] sm:$0x3] %v941_v37 }
 0x1e2   :  { %974 = shalt.err (!%p971_p4)
}
 0x1e3   :  { %s975_s5 = scalar_lea.hbm %s1558_s4, 32 }
 0x1e4   :  { %p976_p5 = scmp.ne.s32.totalorder %s1558_s4, %s975_s5  ;;  %p979_p6 = scmp.lt.u32.totalorder %s975_s5, %s1558_s4 }
 0x1e6   :  { %p981_p7 = pnand %p979_p6, %p976_p5 }
 0x1e8   :  { %984 = shalt.err (!%p981_p7)
}
 0x1e9   :  { %953 = dma.vmem_to_hbm [thread:$0]  %s951_s27, 32, %s1558_s4, [#allocation4]  }
 0x1ea   :  { %985 = dma.done.wait [#allocation4], 32  }
 0x1eb   :  { %986 = vsyncadd [#allocation4], 4294967264 }
 0x1ec   :  { %957 = vsyncpa [#allocation4], 1 }

</bundles_post_ra>
